<compile_context>
chip_gen: v7x
topology: tpu7x:2x2x1
jax: 0.10.0
libtpu: 0.0.40
codegen_flags: <defaults>
</compile_context>

<pallas_src>
import functools

import jax
import jax.numpy as jnp
from jax import lax
from jax.experimental import pallas as pl
from jax.experimental.pallas import tpu as pltpu

BN_EPS = 1e-5


# ----------------------------------------------------------------------------
# Helpers
# ----------------------------------------------------------------------------
def _round_up(v, m):
    return ((v + m - 1) // m) * m


def _pad_to(a, shape):
    pads = [(0, t - s) for s, t in zip(a.shape, shape)]
    return jnp.pad(a, pads)


def _full_spec(shape):
    # Whole (padded, lane-dense) array as a single VMEM block.
    return pl.BlockSpec(shape, lambda: tuple(0 for _ in shape))


# ----------------------------------------------------------------------------
# Fused kernel factory
# ----------------------------------------------------------------------------
def _make_fused_mlp_kernel(num_layers):
    """Whole MLP forward in one invocation.

    Ref order: n_real(SMEM), inv_n(SMEM), x, w[0..L-1], b_last,
               gamma[0..L-2], beta[0..L-2], out
    """
    n_bn = num_layers - 1

    def kernel(*refs):
        n_ref = refs[0]          # (1,1) int32 SMEM
        inv_n_ref = refs[1]      # (1,1) f32   SMEM
        x_ref = refs[2]          # (n_pad, f_in_pad) bf16
        w_refs = refs[3:3 + num_layers]
        b_last_ref = refs[3 + num_layers]
        gamma_refs = refs[4 + num_layers:4 + num_layers + n_bn]
        beta_refs = refs[4 + num_layers + n_bn:4 + num_layers + 2 * n_bn]
        o_ref = refs[-1]

        n_pad = x_ref.shape[0]
        n_real = n_ref[0, 0]
        inv_n = inv_n_ref[0, 0]

        # (8, n_pad) selector: row 0 = 1.0 for real batch rows, everything else
        # 0.  Batch stats become tiny MXU matmuls instead of XLU sublane sums.
        sub_ids = lax.broadcasted_iota(jnp.int32, (8, n_pad), 0)
        col_ids = lax.broadcasted_iota(jnp.int32, (8, n_pad), 1)
        stat_mat = jnp.where((sub_ids == 0) & (col_ids < n_real),
                             jnp.float32(1.0), jnp.float32(0.0))
        # (n_pad, 1) bool mask to re-zero padded rows after the BN affine.
        row_mask = lax.broadcasted_iota(jnp.int32, (n_pad, 1), 0) < n_real

        h = x_ref[...]  # bf16; padded rows / cols are already zero.

        for i in range(num_layers - 1):
            # Bias omitted: BN's batch-mean subtraction cancels it exactly.
            y = jnp.dot(h, w_refs[i][...], preferred_element_type=jnp.float32)

            # Batch statistics on the MXU (f32 math).
            sum_y = jnp.dot(stat_mat, y,
                            preferred_element_type=jnp.float32)[0:1, :]
            sum_y2 = jnp.dot(stat_mat, y * y,
                             preferred_element_type=jnp.float32)[0:1, :]
            mean = sum_y * inv_n
            var = jnp.maximum(sum_y2 * inv_n - mean * mean, 0.0)
            inv_std = lax.rsqrt(var + BN_EPS)

            # BN + ReLU folded into one affine + select.
            scale = inv_std * gamma_refs[i][...]
            shift = beta_refs[i][...] - mean * scale
            h_f32 = jnp.where(row_mask,
                              jnp.maximum(y * scale + shift, 0.0),
                              0.0)
            h = h_f32.astype(jnp.bfloat16)   # bf16 operand for next MXU pass

        y = jnp.dot(h, w_refs[-1][...], preferred_element_type=jnp.float32)
        o_ref[...] = (y + b_last_ref[...]).astype(o_ref.dtype)

    return kernel


# ----------------------------------------------------------------------------
# Forward wrapper (single fused pallas_call)
# ----------------------------------------------------------------------------
@functools.partial(jax.jit, static_argnames=("num_layers", "out_dim"))
def _fused_forward(x, w_pad, b_last_pad, gammas_pad, betas_pad, *,
                   num_layers, out_dim):
    n, f_in = x.shape
    # bf16 activations pack 2 rows per sublane -> pad batch to 16.
    n_pad = _round_up(max(n, 16), 16)
    f_in_pad = w_pad[0].shape[0]
    out_pad = w_pad[-1].shape[1]

    x_p = jnp.pad(x.astype(jnp.bfloat16),
                  ((0, n_pad - n), (0, f_in_pad - f_in)))
    n_arr = jnp.full((1, 1), n, jnp.int32)
    inv_n_arr = jnp.full((1, 1), 1.0 / n, jnp.float32)

    in_arrays = ([n_arr, inv_n_arr, x_p] + list(w_pad) + [b_last_pad]
                 + list(gammas_pad) + list(betas_pad))
    smem_spec = pl.BlockSpec(memory_space=pltpu.MemorySpace.SMEM)
    in_specs = [smem_spec, smem_spec] + [_full_spec(a.shape)
                                         for a in in_arrays[2:]]

    # Explicit VMEM budget: resident operands + output + a handful of f32
    # activation-sized temporaries, with headroom.
    def _nbytes(a):
        return a.size * jnp.dtype(a.dtype).itemsize

    max_feat = max([f_in_pad] + [w.shape[1] for w in w_pad])
    est = (sum(_nbytes(a) for a in in_arrays[2:])
           + n_pad * out_pad * 4
           + 6 * n_pad * max_feat * 4)
    vmem_limit = int(min(128 * 1024 * 1024, max(32 * 1024 * 1024, 2 * est)))

    kernel = _make_fused_mlp_kernel(num_layers)
    out = pl.pallas_call(
        kernel,
        out_shape=jax.ShapeDtypeStruct((n_pad, out_pad), jnp.float32),
        in_specs=in_specs,
        out_specs=_full_spec((n_pad, out_pad)),
        compiler_params=pltpu.CompilerParams(vmem_limit_bytes=vmem_limit),
    )(*in_arrays)
    return out[:n, :out_dim]


# ----------------------------------------------------------------------------
# MLP module (parameter container + forward orchestration)
# ----------------------------------------------------------------------------
class MLP:
    def __init__(self, num_layers, input_dim, hidden_dim, output_dim, key):
        if num_layers < 1:
            raise ValueError("Number of layers should be positive!")
        self.num_layers = num_layers
        self.output_dim = output_dim

        def init_linear(k, fan_in, fan_out):
            # PyTorch-like uniform(-1/sqrt(fan_in), 1/sqrt(fan_in)).
            kw, kb = jax.random.split(k)
            bound = 1.0 / float(fan_in) ** 0.5
            w = jax.random.uniform(kw, (fan_in, fan_out), jnp.float32, -bound, bound)
            b = jax.random.uniform(kb, (1, fan_out), jnp.float32, -bound, bound)
            return w, b

        if num_layers == 1:
            dims = [input_dim, output_dim]
        else:
            dims = [input_dim] + [hidden_dim] * (num_layers - 1) + [output_dim]

        keys = jax.random.split(key, num_layers)
        self.linears = [init_linear(keys[i], dims[i], dims[i + 1])
                        for i in range(num_layers)]
        # BatchNorm1d affine params: gamma=1, beta=0 (batch-stat / training mode,
        # matching the reference; eval-mode running stats are not modeled).
        self.batch_norms = [
            (jnp.ones((1, hidden_dim), jnp.float32),
             jnp.zeros((1, hidden_dim), jnp.float32))
            for _ in range(num_layers - 1)
        ]

        # --- lane-dense padded parameters for the fused kernel --------------
        pdims = [_round_up(d, 128) for d in dims]
        w_pad = []
        for i, (w, _b) in enumerate(self.linears):
            w_pad.append(_pad_to(w, (pdims[i], pdims[i + 1])).astype(jnp.bfloat16))
        self._w_pad = tuple(w_pad)
        # Only the final layer keeps its bias (BN cancels the others exactly).
        b_last = self.linears[-1][1]
        self._b_last_pad = _pad_to(b_last, (1, pdims[-1]))
        self._gamma_pad = tuple(_pad_to(g, (1, pdims[i + 1]))
                                for i, (g, _) in enumerate(self.batch_norms))
        self._beta_pad = tuple(_pad_to(b, (1, pdims[i + 1]))
                               for i, (_, b) in enumerate(self.batch_norms))

    def __call__(self, x):
        return _fused_forward(x, self._w_pad, self._b_last_pad,
                              self._gamma_pad, self._beta_pad,
                              num_layers=self.num_layers,
                              out_dim=self.output_dim)


# ----------------------------------------------------------------------------
# Reference (pure JAX, f32) for sanity checking
# ----------------------------------------------------------------------------
def mlp_ref(mlp, x):
    if mlp.num_layers == 1:
        w, b = mlp.linears[0]
        return x @ w + b
    h = x
    for i in range(mlp.num_layers - 1):
        w, b = mlp.linears[i]
        gamma, beta = mlp.batch_norms[i]
        y = h @ w + b
        mean = jnp.mean(y, axis=0, keepdims=True)
        var = jnp.mean((y - mean) ** 2, axis=0, keepdims=True)
        y = (y - mean) / jnp.sqrt(var + BN_EPS) * gamma + beta
        h = jnp.maximum(y, 0.0)
    w, b = mlp.linears[-1]
    return h @ w + b


if __name__ == "__main__":
    key = jax.random.PRNGKey(0)
    k_param, k_param1, k_x = jax.random.split(key, 3)

    # Multi-layer path (3 layers) exercising row padding/masking (10 -> 16).
    num_layers, input_dim, hidden_dim, output_dim = 3, 16, 32, 8
    batch = 10

    mlp = MLP(num_layers, input_dim, hidden_dim, output_dim, k_param)
    x = jax.random.normal(k_x, (batch, input_dim), jnp.float32)

    out = jax.block_until_ready(mlp(x))
    ref = mlp_ref(mlp, x)
    assert out.shape == (batch, output_dim)
    # Matmuls run with bf16 operands (f32 accumulation) -> loosened tolerance.
    assert jnp.allclose(out, ref, atol=5e-2, rtol=5e-2), \
        "mismatch vs reference (multi-layer)"

    # Single-layer path (plain linear, bias kept).
    mlp1 = MLP(1, input_dim, hidden_dim, output_dim, k_param1)
    out1 = jax.block_until_ready(mlp1(x))
    ref1 = mlp_ref(mlp1, x)
    assert out1.shape == (batch, output_dim)
    assert jnp.allclose(out1, ref1, atol=5e-2, rtol=5e-2), \
        "mismatch vs reference (single-layer)"

    print("KERNEL_OK")
</pallas_src>

<mosaic_0001>
module attributes {stable_mosaic.version = 11 : i64} {
  func.func @kernel(%arg0: memref<1x1xi32, #tpu.memory_space<smem>>, %arg1: memref<1x1xf32, #tpu.memory_space<smem>>, %arg2: memref<16x128xbf16, #tpu.memory_space<vmem>>, %arg3: memref<128x128xbf16, #tpu.memory_space<vmem>>, %arg4: memref<128x128xbf16, #tpu.memory_space<vmem>>, %arg5: memref<128x128xbf16, #tpu.memory_space<vmem>>, %arg6: memref<1x128xf32, #tpu.memory_space<vmem>>, %arg7: memref<1x128xf32, #tpu.memory_space<vmem>>, %arg8: memref<1x128xf32, #tpu.memory_space<vmem>>, %arg9: memref<1x128xf32, #tpu.memory_space<vmem>>, %arg10: memref<1x128xf32, #tpu.memory_space<vmem>>, %arg11: memref<16x128xf32, #tpu.memory_space<vmem>>) attributes {dimension_semantics = [], scalar_prefetch = 0 : i64, scratch_operands = 0 : i64, tpu.core_type = #tpu.core_type<tc>} {
    %c0 = arith.constant 0 : index
    %c0_0 = arith.constant 0 : index
    %0 = memref.load %arg0[%c0, %c0_0] : memref<1x1xi32, #tpu.memory_space<smem>>
    %c0_1 = arith.constant 0 : index
    %c0_2 = arith.constant 0 : index
    %1 = memref.load %arg1[%c0_1, %c0_2] : memref<1x1xf32, #tpu.memory_space<smem>>
    %2 = tpu.iota {dimensions = array<i32: 0>} : vector<8x16xi32>
    %3 = tpu.iota {dimensions = array<i32: 1>} : vector<8x16xi32>
    %c0_i32 = arith.constant 0 : i32
    %4 = vector.broadcast %c0_i32 : i32 to vector<8x16xi32>
    %5 = arith.cmpi eq, %2, %4 : vector<8x16xi32>
    %6 = vector.broadcast %0 : i32 to vector<8x16xi32>
    %7 = arith.cmpi slt, %3, %6 : vector<8x16xi32>
    %8 = arith.andi %5, %7 : vector<8x16xi1>
    %cst = arith.constant 1.000000e+00 : f32
    %cst_3 = arith.constant 0.000000e+00 : f32
    %9 = vector.broadcast %cst : f32 to vector<8x16xf32>
    %10 = vector.broadcast %cst_3 : f32 to vector<8x16xf32>
    %11 = arith.select %8, %9, %10 : vector<8x16xi1>, vector<8x16xf32>
    %12 = tpu.iota {dimensions = array<i32: 0>} : vector<16x1xi32>
    %13 = vector.broadcast %0 : i32 to vector<16x1xi32>
    %14 = arith.cmpi slt, %12, %13 : vector<16x1xi32>
    %c0_4 = arith.constant 0 : index
    %c0_5 = arith.constant 0 : index
    %15 = vector.load %arg2[%c0_4, %c0_5] : memref<16x128xbf16, #tpu.memory_space<vmem>>, vector<16x128xbf16>
    %c0_6 = arith.constant 0 : index
    %c0_7 = arith.constant 0 : index
    %16 = vector.load %arg3[%c0_6, %c0_7] : memref<128x128xbf16, #tpu.memory_space<vmem>>, vector<128x128xbf16>
    %cst_8 = arith.constant dense<0.000000e+00> : vector<16x128xf32>
    %17 = tpu.matmul %15, %16, %cst_8 {dimension_numbers = #tpu.dot_dimension_numbers<[1], [0], [0], [1], [0, 0, 1, 1], [], []>} : vector<16x128xbf16>, vector<128x128xbf16>, vector<16x128xf32> -> vector<16x128xf32>
    %cst_9 = arith.constant dense<0.000000e+00> : vector<8x128xf32>
    %18 = tpu.matmul %11, %17, %cst_9 {dimension_numbers = #tpu.dot_dimension_numbers<[1], [0], [0], [1], [0, 0, 1, 1], [], []>} : vector<8x16xf32>, vector<16x128xf32>, vector<8x128xf32> -> vector<8x128xf32>
    %19 = vector.extract_strided_slice %18 {offsets = [0, 0], sizes = [1, 128], strides = [1, 1]} : vector<8x128xf32> to vector<1x128xf32>
    %20 = arith.mulf %17, %17 : vector<16x128xf32>
    %cst_10 = arith.constant dense<0.000000e+00> : vector<8x128xf32>
    %21 = tpu.matmul %11, %20, %cst_10 {dimension_numbers = #tpu.dot_dimension_numbers<[1], [0], [0], [1], [0, 0, 1, 1], [], []>} : vector<8x16xf32>, vector<16x128xf32>, vector<8x128xf32> -> vector<8x128xf32>
    %22 = vector.extract_strided_slice %21 {offsets = [0, 0], sizes = [1, 128], strides = [1, 1]} : vector<8x128xf32> to vector<1x128xf32>
    %23 = vector.broadcast %1 : f32 to vector<1x128xf32>
    %24 = arith.mulf %19, %23 : vector<1x128xf32>
    %25 = vector.broadcast %1 : f32 to vector<1x128xf32>
    %26 = arith.mulf %22, %25 : vector<1x128xf32>
    %27 = arith.mulf %24, %24 : vector<1x128xf32>
    %28 = arith.subf %26, %27 : vector<1x128xf32>
    %cst_11 = arith.constant 0.000000e+00 : f32
    %29 = vector.broadcast %cst_11 : f32 to vector<1x128xf32>
    %30 = arith.maximumf %28, %29 : vector<1x128xf32>
    %cst_12 = arith.constant 9.99999974E-6 : f32
    %31 = vector.broadcast %cst_12 : f32 to vector<1x128xf32>
    %32 = arith.addf %30, %31 : vector<1x128xf32>
    %33 = math.rsqrt %32 : vector<1x128xf32>
    %c0_13 = arith.constant 0 : index
    %c0_14 = arith.constant 0 : index
    %34 = vector.load %arg7[%c0_13, %c0_14] : memref<1x128xf32, #tpu.memory_space<vmem>>, vector<1x128xf32>
    %35 = arith.mulf %33, %34 : vector<1x128xf32>
    %c0_15 = arith.constant 0 : index
    %c0_16 = arith.constant 0 : index
    %36 = vector.load %arg9[%c0_15, %c0_16] : memref<1x128xf32, #tpu.memory_space<vmem>>, vector<1x128xf32>
    %37 = arith.mulf %24, %35 : vector<1x128xf32>
    %38 = arith.subf %36, %37 : vector<1x128xf32>
    %39 = vector.broadcast %35 : vector<1x128xf32> to vector<16x128xf32>
    %40 = arith.mulf %17, %39 : vector<16x128xf32>
    %41 = vector.broadcast %38 : vector<1x128xf32> to vector<16x128xf32>
    %42 = arith.addf %40, %41 : vector<16x128xf32>
    %cst_17 = arith.constant 0.000000e+00 : f32
    %43 = vector.broadcast %cst_17 : f32 to vector<16x128xf32>
    %44 = arith.maximumf %42, %43 : vector<16x128xf32>
    %cst_18 = arith.constant 0.000000e+00 : f32
    %45 = vector.shape_cast %14 : vector<16x1xi1> to vector<16x1xi1>
    %46 = vector.broadcast %45 : vector<16x1xi1> to vector<16x128xi1>
    %47 = vector.broadcast %cst_18 : f32 to vector<16x128xf32>
    %48 = arith.select %46, %44, %47 : vector<16x128xi1>, vector<16x128xf32>
    %49 = arith.truncf %48 : vector<16x128xf32> to vector<16x128xbf16>
    %c0_19 = arith.constant 0 : index
    %c0_20 = arith.constant 0 : index
    %50 = vector.load %arg4[%c0_19, %c0_20] : memref<128x128xbf16, #tpu.memory_space<vmem>>, vector<128x128xbf16>
    %cst_21 = arith.constant dense<0.000000e+00> : vector<16x128xf32>
    %51 = tpu.matmul %49, %50, %cst_21 {dimension_numbers = #tpu.dot_dimension_numbers<[1], [0], [0], [1], [0, 0, 1, 1], [], []>} : vector<16x128xbf16>, vector<128x128xbf16>, vector<16x128xf32> -> vector<16x128xf32>
    %cst_22 = arith.constant dense<0.000000e+00> : vector<8x128xf32>
    %52 = tpu.matmul %11, %51, %cst_22 {dimension_numbers = #tpu.dot_dimension_numbers<[1], [0], [0], [1], [0, 0, 1, 1], [], []>} : vector<8x16xf32>, vector<16x128xf32>, vector<8x128xf32> -> vector<8x128xf32>
    %53 = vector.extract_strided_slice %52 {offsets = [0, 0], sizes = [1, 128], strides = [1, 1]} : vector<8x128xf32> to vector<1x128xf32>
    %54 = arith.mulf %51, %51 : vector<16x128xf32>
    %cst_23 = arith.constant dense<0.000000e+00> : vector<8x128xf32>
    %55 = tpu.matmul %11, %54, %cst_23 {dimension_numbers = #tpu.dot_dimension_numbers<[1], [0], [0], [1], [0, 0, 1, 1], [], []>} : vector<8x16xf32>, vector<16x128xf32>, vector<8x128xf32> -> vector<8x128xf32>
    %56 = vector.extract_strided_slice %55 {offsets = [0, 0], sizes = [1, 128], strides = [1, 1]} : vector<8x128xf32> to vector<1x128xf32>
    %57 = vector.broadcast %1 : f32 to vector<1x128xf32>
    %58 = arith.mulf %53, %57 : vector<1x128xf32>
    %59 = vector.broadcast %1 : f32 to vector<1x128xf32>
    %60 = arith.mulf %56, %59 : vector<1x128xf32>
    %61 = arith.mulf %58, %58 : vector<1x128xf32>
    %62 = arith.subf %60, %61 : vector<1x128xf32>
    %cst_24 = arith.constant 0.000000e+00 : f32
    %63 = vector.broadcast %cst_24 : f32 to vector<1x128xf32>
    %64 = arith.maximumf %62, %63 : vector<1x128xf32>
    %cst_25 = arith.constant 9.99999974E-6 : f32
    %65 = vector.broadcast %cst_25 : f32 to vector<1x128xf32>
    %66 = arith.addf %64, %65 : vector<1x128xf32>
    %67 = math.rsqrt %66 : vector<1x128xf32>
    %c0_26 = arith.constant 0 : index
    %c0_27 = arith.constant 0 : index
    %68 = vector.load %arg8[%c0_26, %c0_27] : memref<1x128xf32, #tpu.memory_space<vmem>>, vector<1x128xf32>
    %69 = arith.mulf %67, %68 : vector<1x128xf32>
    %c0_28 = arith.constant 0 : index
    %c0_29 = arith.constant 0 : index
    %70 = vector.load %arg10[%c0_28, %c0_29] : memref<1x128xf32, #tpu.memory_space<vmem>>, vector<1x128xf32>
    %71 = arith.mulf %58, %69 : vector<1x128xf32>
    %72 = arith.subf %70, %71 : vector<1x128xf32>
    %73 = vector.broadcast %69 : vector<1x128xf32> to vector<16x128xf32>
    %74 = arith.mulf %51, %73 : vector<16x128xf32>
    %75 = vector.broadcast %72 : vector<1x128xf32> to vector<16x128xf32>
    %76 = arith.addf %74, %75 : vector<16x128xf32>
    %cst_30 = arith.constant 0.000000e+00 : f32
    %77 = vector.broadcast %cst_30 : f32 to vector<16x128xf32>
    %78 = arith.maximumf %76, %77 : vector<16x128xf32>
    %cst_31 = arith.constant 0.000000e+00 : f32
    %79 = vector.shape_cast %14 : vector<16x1xi1> to vector<16x1xi1>
    %80 = vector.broadcast %79 : vector<16x1xi1> to vector<16x128xi1>
    %81 = vector.broadcast %cst_31 : f32 to vector<16x128xf32>
    %82 = arith.select %80, %78, %81 : vector<16x128xi1>, vector<16x128xf32>
    %83 = arith.truncf %82 : vector<16x128xf32> to vector<16x128xbf16>
    %c0_32 = arith.constant 0 : index
    %c0_33 = arith.constant 0 : index
    %84 = vector.load %arg5[%c0_32, %c0_33] : memref<128x128xbf16, #tpu.memory_space<vmem>>, vector<128x128xbf16>
    %cst_34 = arith.constant dense<0.000000e+00> : vector<16x128xf32>
    %85 = tpu.matmul %83, %84, %cst_34 {dimension_numbers = #tpu.dot_dimension_numbers<[1], [0], [0], [1], [0, 0, 1, 1], [], []>} : vector<16x128xbf16>, vector<128x128xbf16>, vector<16x128xf32> -> vector<16x128xf32>
    %c0_35 = arith.constant 0 : index
    %c0_36 = arith.constant 0 : index
    %86 = vector.load %arg6[%c0_35, %c0_36] : memref<1x128xf32, #tpu.memory_space<vmem>>, vector<1x128xf32>
    %87 = vector.broadcast %86 : vector<1x128xf32> to vector<16x128xf32>
    %88 = arith.addf %85, %87 : vector<16x128xf32>
    %c0_37 = arith.constant 0 : index
    %c0_38 = arith.constant 0 : index
    %89 = vector.load %arg11[%c0_37, %c0_38] : memref<16x128xf32, #tpu.memory_space<vmem>>, vector<16x128xf32>
    tpu.vector_store %arg11[%c0_37, %c0_38], %88 {strides = array<i32>} : memref<16x128xf32, #tpu.memory_space<vmem>>, vector<16x128xf32>,
    return
  }
}

</mosaic_0001>

<bundles_post_ra>
// kernel: _fused_forward.1
= control target key start
LH: loop header
LB: loop body
LE: loop exit
PB: predicated region body
PF: predicated region fallthrough
CT: control target
= control target key end

     0   :  { %18 = vsyncpa [#allocation5], 0  ;;  %s1317_s0 = inlined_call_operand.<no memory space> [shape: s32[1,1], index: 0, kind: input, shape index: {}]   ;;  %s1318_s1 = inlined_call_operand.<no memory space> [shape: f32[1,1], index: 1, kind: input, shape index: {}]   ;;  %s1319_s2 = inlined_call_operand.vmem [shape: bf16[16,128], index: 2, kind: input, shape index: {}]   ;;  %s1320_s3 = inlined_call_operand.hbm [shape: bf16[128,128], index: 3, kind: input, shape index: {}]   ;;  %s1321_s4 = inlined_call_operand.hbm [shape: bf16[128,128], index: 4, kind: input, shape index: {}]   ;;  %s1322_s5 = inlined_call_operand.hbm [shape: bf16[128,128], index: 5, kind: input, shape index: {}]   ;;  %s1323_s6 = inlined_call_operand.vmem [shape: f32[1,128], index: 6, kind: input, shape index: {}]   ;;  %s1324_s7 = inlined_call_operand.vmem [shape: f32[1,128], index: 7, kind: input, shape index: {}]   ;;  %s1325_s8 = inlined_call_operand.vmem [shape: f32[1,128], index: 8, kind: input, shape index: {}]   ;;  %s1326_s9 = inlined_call_operand.vmem [shape: f32[1,128], index: 9, kind: input, shape index: {}]   ;;  %s1327_s10 = inlined_call_operand.vmem [shape: f32[1,128], index: 10, kind: input, shape index: {}]   ;;  %s1328_s11 = inlined_call_operand.vmem [shape: f32[16,128], index: 11, kind: output, shape index: {}]  }
   0x1   :  { %19 = vsyncpa [#allocation7], 0  ;;  %s1071_s17 = smov [#allocation6]   ;;  %s1072_s19 = smov [#allocation4]  }
   0x2   :  { %s43_s18 = sshll.u32 %s1071_s17, 4  ;;  %s31_s20 = sshll.u32 %s1072_s19, 4  ;;  %s44_s18 = int_to_ptr.vmem [resolvable:$true] %s43_s18  ;;  %s1139_s20 = int_to_ptr.vmem [resolvable:$true] %s31_s20 }
   0x3   :  { %s1001_s23 = scalar_lea.hbm %s1321_s4, 1024 }
   0x4   :  { %p1002_p0 = scmp.ne.s32.totalorder %s1321_s4, %s1001_s23  ;;  %p1005_p1 = scmp.lt.u32.totalorder %s1001_s23, %s1321_s4 }
   0x6   :  { %p1007_p2 = pnand %p1005_p1, %p1002_p0 }
   0x8   :  { %1010 = shalt.err (!%p1007_p2)
}
   0x9   :  { %s1011_s28 = scalar_lea.vmem %s44_s18, 1024  ;;  %p1016_p4 = scmp.lt.s32.totalorder %s44_s18, %s44_s18 }
   0xa   :  { %p1012_p3 = scmp.ne.s32.totalorder %s44_s18, %s1011_s28  ;;  %p1017_p5 = scmp.lt.s32.totalorder %s1011_s28, %s1011_s28 }
   0xc   :  { %p1018_p6 = por %p1017_p5, %p1016_p4 }
   0xe   :  { %p1019_p7 = pnand %p1018_p6, %p1012_p3 }
  0x10   :  { %1022 = shalt.err (!%p1019_p7)
}
  0x11   :  { %s1073_s29 = smov 64   ;;  %s1074_s30 = smov 4  }
  0x12   :  { %49 = dma.hbm_to_vmem [thread:$0]  %s1321_s4, 1024, %s44_s18, [#allocation7], %s1073_s29, %s1073_s29, %s1074_s30  }
  0x13   :  { %s1023_s16 = scalar_lea.hbm %s1320_s3, 1024 }
  0x14   :  { %p1024_p8 = scmp.ne.s32.totalorder %s1320_s3, %s1023_s16  ;;  %p1027_p9 = scmp.lt.u32.totalorder %s1023_s16, %s1320_s3 }
  0x16   :  { %p1029_p10 = pnand %p1027_p9, %p1024_p8 }
  0x18   :  { %1032 = shalt.err (!%p1029_p10)
}
  0x19   :  { %s1033_s23 = scalar_lea.vmem %s1139_s20, 1024  ;;  %p1038_p12 = scmp.lt.s32.totalorder %s1139_s20, %s1139_s20 }
  0x1a   :  { %p1034_p11 = scmp.ne.s32.totalorder %s1139_s20, %s1033_s23  ;;  %p1039_p13 = scmp.lt.s32.totalorder %s1033_s23, %s1033_s23 }
  0x1c   :  { %p1040_p0 = por %p1039_p13, %p1038_p12 }
  0x1e   :  { %p1041_p1 = pnand %p1040_p0, %p1034_p11 }
  0x20   :  { %1044 = shalt.err (!%p1041_p1)
}
  0x21   :  { %37 = dma.hbm_to_vmem [thread:$0]  %s1320_s3, 1024, %s1139_s20, [#allocation5], %s1073_s29, %s1073_s29, %s1074_s30  }
  0x22   :  { %s1075_s24 = smov [#allocation8]   ;;  %s1045_s28 = scalar_lea.hbm %s1322_s5, 1024 }
  0x23   :  { %s55_s25 = sshll.u32 %s1075_s24, 4  ;;  %p1046_p2 = scmp.ne.s32.totalorder %s1322_s5, %s1045_s28  ;;  %s56_s25 = int_to_ptr.vmem [resolvable:$true] %s55_s25 }
  0x24   :  { %p1049_p3 = scmp.lt.u32.totalorder %s1045_s28, %s1322_s5 }
  0x26   :  { %p1051_p4 = pnand %p1049_p3, %p1046_p2 }
  0x28   :  { %1054 = shalt.err (!%p1051_p4)
}
  0x29   :  { %s1055_s16 = scalar_lea.vmem %s56_s25, 1024  ;;  %p1060_p6 = scmp.lt.s32.totalorder %s56_s25, %s56_s25 }
  0x2a   :  { %p1056_p5 = scmp.ne.s32.totalorder %s56_s25, %s1055_s16  ;;  %p1061_p7 = scmp.lt.s32.totalorder %s1055_s16, %s1055_s16 }
  0x2c   :  { %p1062_p8 = por %p1061_p7, %p1060_p6 }
  0x2e   :  { %p1063_p9 = pnand %p1062_p8, %p1056_p5 }
  0x30   :  { %1066 = shalt.err (!%p1063_p9)
}
  0x31   :  { %61 = dma.hbm_to_vmem [thread:$0]  %s1322_s5, 1024, %s56_s25, [#allocation7], %s1073_s29, %s1073_s29, %s1074_s30  }
  0x32   :  { %1067 = dma.done.wait [#allocation5], 1024  }
  0x33   :  { %1068 = vsyncadd [#allocation5], 4294966272 }
  0x34   :  { %1069 = dma.done.wait [#allocation7], 2048  }
  0x35   :  { %1070 = vsyncadd [#allocation7], 4294965248  ;;  %v1076_v0 = vmov 0.0   ;;  %vm1077_vm0 = vmmov 0   ;;  %v972_v1 = vld [vmem:[#allocation4] sm:$0xff]   ;;  %v973_v2 = vld [vmem:[#allocation4 + $0x8] sm:$0xff]   ;;  %v84_v11 = vlaneseq  ;;  %v1215_v14 = vstv %s1317_s0 }
  0x36   :  { %864 = vmatprep.subr.bf16.mxu0 %v1076_v0  ;;  %880 = vmatprep.mubr.msk.bf16.mxu0 %vm1077_vm0, %v1076_v0  ;;  %v974_v3 = vld [vmem:[#allocation4 + $0x10] sm:$0xff]   ;;  %v975_v4 = vld [vmem:[#allocation4 + $0x18] sm:$0xff]   ;;  %v976_v5 = vld [vmem:[#allocation4 + $0x20] sm:$0xff]   ;;  %v1078_v10 = vmov 0.0|0.0   ;;  %vm209_vm4 = vcmask 130048   ;;  %v1253_v32 = vstv %s1318_s1 }
  0x37   :  { %898 = vmatprep.subr.bf16.mxu1 %v1076_v0  ;;  %914 = vmatprep.mubr.msk.bf16.mxu1 %vm1077_vm0, %v1076_v0  ;;  %v977_v6 = vld [vmem:[#allocation4 + $0x28] sm:$0xff]   ;;  %v978_v7 = vld [vmem:[#allocation4 + $0x30] sm:$0xff]   ;;  %v979_v8 = vld [vmem:[#allocation4 + $0x38] sm:$0xff]   ;;  %v1210_v12 = vshrl.u32 %v84_v11, 7  ;;  %v87_v13 = vand.u32 127, %v84_v11 }
  0x38   :  { %865 = vmatpush3.bf16.msra.mxu0 %v972_v1  ;;  %v980_v9 = vld [vmem:[%s1319_s2] sm:$0xff]   ;;  %v982_v25 = vld [vmem:[#allocation6 + $0x8] sm:$0xff]   ;;  %v983_v26 = vld [vmem:[#allocation6 + $0x10] sm:$0xff]  }
  0x39   :  { %866 = vmatprep.subr.bf16.mxu0 %v1076_v0  ;;  %vm88_vm1 = vcmp.eq.s32.totalorder %v1210_v12, 0  ;;  %vm90_vm2 = vcmp.lt.s32.totalorder %v87_v13, %v1215_v14  ;;  %v981_v24 = vld [vmem:[#allocation6] sm:$0xff]   ;;  %v984_v27 = vld [vmem:[#allocation6 + $0x18] sm:$0xff]   ;;  %v986_v29 = vld [vmem:[#allocation6 + $0x28] sm:$0xff]   ;;  %v1261_v44 = vsub.s32 0, %v1210_v12  ;;  %v93_v50 = vadd.s32 8, %v1210_v12 }
  0x3a   :  { %vm91_vm3 = vmand %vm88_vm1, %vm90_vm2  ;;  %899 = vmatpush3.bf16.msra.mxu1 %v981_v24  ;;  %v985_v28 = vld [vmem:[#allocation6 + $0x20] sm:$0xff]   ;;  %v987_v30 = vld [vmem:[#allocation6 + $0x30] sm:$0xff]   ;;  %vm94_vm5 = vcmp.lt.s32.totalorder %v1210_v12, %v1215_v14 }
  0x3b   :  { %v1230_v23 = vsel %vm91_vm3, 1.0, %v1076_v0  ;;  %900 = vmatprep.subr.bf16.mxu1 %v1076_v0  ;;  %v988_v31 = vld [vmem:[#allocation6 + $0x38] sm:$0xff]   ;;  %v363_v43 = vld [vmem:[%s1324_s7] sm:$0x1]  ;;  %vm95_vm6 = vcmp.lt.s32.totalorder %v93_v50, %v1215_v14  ;;  %v994_v11 = vld [vmem:[#allocation8 + $0x28] sm:$0xff]  }
  0x3c   :  { %867 = vmatpush3.bf16.msra.mxu0 %v973_v2  ;;  %v365_v47 = vld [vmem:[%s1326_s9] sm:$0x1]  ;;  %vm1274_vm7 = vmpackc.low %vm95_vm6, %vm94_vm5  ;;  %v995_v12 = vld [vmem:[#allocation8 + $0x30] sm:$0xff]  }
  0x3d   :  { %868 = vmatprep.subr.bf16.mxu0 %v1076_v0  ;;  %v996_v13 = vld [vmem:[#allocation8 + $0x38] sm:$0xff]   ;;  %v645_v24 = vld [vmem:[%s1325_s8] sm:$0x1] }
  0x3e   :  { %901 = vmatpush3.bf16.msra.mxu1 %v982_v25 }
  0x3f   :  { %902 = vmatprep.subr.bf16.mxu1 %v1076_v0 }
  0x40   :  { %869 = vmatpush3.bf16.msra.mxu0 %v974_v3 }
  0x41   :  { %870 = vmatprep.subr.bf16.mxu0 %v1076_v0 }
  0x42   :  { %903 = vmatpush3.bf16.msra.mxu1 %v983_v26  ;;  %v647_v26 = vld [vmem:[%s1327_s10] sm:$0x1] }
  0x43   :  { %904 = vmatprep.subr.bf16.mxu1 %v1076_v0 }
  0x44   :  { %871 = vmatpush3.bf16.msra.mxu0 %v975_v4 }
  0x45   :  { %872 = vmatprep.subr.bf16.mxu0 %v1076_v0 }
  0x46   :  { %905 = vmatpush3.bf16.msra.mxu1 %v984_v27 }
  0x47   :  { %906 = vmatprep.subr.bf16.mxu1 %v1076_v0 }
  0x48   :  { %873 = vmatpush3.bf16.msra.mxu0 %v976_v5 }
  0x49   :  { %874 = vmatprep.subr.bf16.mxu0 %v1076_v0 }
  0x4a   :  { %907 = vmatpush3.bf16.msra.mxu1 %v985_v28 }
  0x4b   :  { %908 = vmatprep.subr.bf16.mxu1 %v1076_v0 }
  0x4c   :  { %875 = vmatpush3.bf16.msra.mxu0 %v977_v6  ;;  %v989_v6 = vld [vmem:[#allocation8] sm:$0xff]  }
  0x4d   :  { %876 = vmatprep.subr.bf16.mxu0 %v1076_v0 }
  0x4e   :  { %909 = vmatpush3.bf16.msra.mxu1 %v986_v29 }
  0x4f   :  { %910 = vmatprep.subr.bf16.mxu1 %v1076_v0 }
  0x50   :  { %877 = vmatpush3.bf16.msra.mxu0 %v978_v7  ;;  %v990_v7 = vld [vmem:[#allocation8 + $0x8] sm:$0xff]  }
  0x51   :  { %878 = vmatprep.subr.bf16.mxu0 %v1076_v0 }
  0x52   :  { %911 = vmatpush3.bf16.msra.mxu1 %v987_v30 }
  0x53   :  { %912 = vmatprep.subr.bf16.mxu1 %v1076_v0 }
  0x54   :  { %879 = vmatpush3.bf16.msra.mxu0 %v979_v8  ;;  %v991_v8 = vld [vmem:[#allocation8 + $0x10] sm:$0xff]  }
  0x55   :  { %952 = vmatprep.subr.bf16.mxu0 %v1078_v10 }
  0x56   :  { %913 = vmatpush3.bf16.msra.mxu1 %v988_v31 }
  0x57   :  { %881 = vmatmul.mubr.bf16.vlgmr.msra.gmra.mrb[0].mxu0 %v980_v9  ;;  %932 = vmatprep.subr.bf16.mxu1 %v1076_v0  ;;  %v992_v9 = vld [vmem:[#allocation8 + $0x18] sm:$0xff]  }
  0x58   :  { %888 = vmatprep.mubr.msk.f32.mxu0 %vm1077_vm0, %v1076_v0 }
 0x12a   :  { %v1219_v15 = vpop.f32.mrb[0].mxu0 }
 0x12b   :  { %v882_v16 = vpop.f32.mrb[1].mxu0  ;;  %v283_v18 = vmul.f32 %v1219_v15, %v1219_v15 }
 0x12c   :  { %v1221_v17 = vpop.f32.mrb[2].mxu0 }
 0x12d   :  { %v953_v19 = vpack.c.bf16 %v1221_v17, %v1219_v15  ;;  %v284_v20 = vmul.f32 %v1221_v17, %v1221_v17  ;;  %v883_v21 = vpop.f32.mrb[3].mxu0 }
 0x12f   :  { %v956_v22 = vpack.c.bf16 %v284_v20, %v283_v18  ;;  %954 = vmatpush3.bf16.msra.mxu0 %v953_v19 }
 0x130   :  { %955 = vmatprep.subr.bf16.mxu0 %v1078_v10 }
 0x132   :  { %889 = vmatmul.mubr.msk.f32.vlgmr.msra.gmra.mrb[4].mxu0 %vm209_vm4, %v1230_v23 }
 0x133   :  { %957 = vmatpush3.bf16.msra.mxu0 %v956_v22  ;;  %895 = vmatprep.mubr.msk.f32.mxu0 %vm1077_vm0, %v1076_v0 }
 0x134   :  { %958 = vmatprep.subr.bf16.mxu0 %v1078_v10 }
 0x136   :  { %896 = vmatmul.mubr.msk.f32.vlgmr.msra.gmra.mrb[6].mxu0 %vm209_vm4, %v1230_v23 }
 0x137   :  { %922 = vmatprep.mubr.msk.f32.mxu0 %vm1077_vm0, %v1076_v0 }
 0x205   :  { %v279_v33 = vpop.f32.mrb[4].mxu0 }
 0x206   :  { %v356_v34 = vmul.f32 %v1253_v32, %v279_v33  ;;  %v890_v35 = vpop.f32.mrb[5].mxu0 }
 0x208   :  { %v358_v37 = vmul.f32 %v356_v34, %v356_v34 }
 0x209   :  { %v351_v36 = vpop.f32.mrb[6].mxu0 }
 0x20a   :  { %v357_v38 = vmul.f32 %v1253_v32, %v351_v36  ;;  %v897_v39 = vpop.f32.mrb[7].mxu0 }
 0x20c   :  { %v359_v40 = vsub.f32 %v357_v38, %v358_v37  ;;  %v813_v38 = vld [vmem:[%s1323_s6] ss:$0 sm:$0xff] }
 0x20e   :  { %v360_v41 = vmax.f32 %v359_v40, 0.0 }
 0x210   :  { %v361_v42 = vadd.f32 1e-05, %v360_v41 }
 0x212   :  { %997 = vrsqrt.f32 %v361_v42 }
 0x21c   :  { %v998_v45 = vpop.eup %997 }
 0x21d   :  { %v364_v46 = vmul.f32 %v998_v45, %v363_v43 }
 0x21f   :  { %v366_v48 = vmul.f32 %v364_v46, %v356_v34  ;;  %v371_v49 = vrot.slane %v364_v46, %v1261_v44 }
 0x221   :  { %v367_v51 = vsub.f32 %v365_v47, %v366_v48  ;;  %v372_v52 = vmul.f32 %v371_v49, %v1219_v15  ;;  %v373_v53 = vmul.f32 %v371_v49, %v1221_v17 }
 0x223   :  { %v378_v54 = vrot.slane %v367_v51, %v1261_v44 }
 0x225   :  { %v380_v55 = vadd.f32 %v378_v54, %v372_v52  ;;  %v381_v56 = vadd.f32 %v378_v54, %v373_v53 }
 0x227   :  { %v382_v57 = vmax.f32 %v380_v55, 0.0  ;;  %v383_v58 = vmax.f32 %v381_v56, 0.0 }
 0x229   :  { %v809_v60 = vpack.c.bf16 %v383_v58, %v382_v57 }
 0x22b   :  { %915 = vmatmul.mubr.msk.bf16.vlgmr.msra.gmra.mrb[0].mxu1 %vm1274_vm7, %v809_v60 }
 0x22c   :  { %948 = vmatprep.mubr.msk.bf16.mxu1 %vm1077_vm0, %v1076_v0  ;;  %933 = vmatpush3.bf16.msra.mxu1 %v989_v6 }
 0x22d   :  { %934 = vmatprep.subr.bf16.mxu1 %v1076_v0 }
 0x230   :  { %935 = vmatpush3.bf16.msra.mxu1 %v990_v7 }
 0x231   :  { %936 = vmatprep.subr.bf16.mxu1 %v1076_v0 }
 0x234   :  { %937 = vmatpush3.bf16.msra.mxu1 %v991_v8 }
 0x235   :  { %938 = vmatprep.subr.bf16.mxu1 %v1076_v0 }
 0x238   :  { %939 = vmatpush3.bf16.msra.mxu1 %v992_v9 }
 0x239   :  { %940 = vmatprep.subr.bf16.mxu1 %v1076_v0 }
 0x2fe   :  { %v489_v61 = vpop.f32.mrb[0].mxu1 }
 0x2ff   :  { %v916_v62 = vpop.f32.mrb[1].mxu1  ;;  %v566_v1 = vmul.f32 %v489_v61, %v489_v61 }
 0x300   :  { %v492_v63 = vpop.f32.mrb[2].mxu1 }
 0x301   :  { %v959_v2 = vpack.c.bf16 %v492_v63, %v489_v61  ;;  %v567_v3 = vmul.f32 %v492_v63, %v492_v63  ;;  %v917_v4 = vpop.f32.mrb[3].mxu1 }
 0x303   :  { %v962_v5 = vpack.c.bf16 %v567_v3, %v566_v1  ;;  %960 = vmatpush3.bf16.msra.mxu0 %v959_v2 }
 0x304   :  { %961 = vmatprep.subr.bf16.mxu0 %v1078_v10  ;;  %v993_v10 = vld [vmem:[#allocation8 + $0x20] sm:$0xff]  }
 0x305   :  { %941 = vmatpush3.bf16.msra.mxu1 %v993_v10 }
 0x306   :  { %923 = vmatmul.mubr.msk.f32.vlgmr.msra.gmra.mrb[8].mxu0 %vm209_vm4, %v1230_v23  ;;  %942 = vmatprep.subr.bf16.mxu1 %v1076_v0 }
 0x307   :  { %963 = vmatpush3.bf16.msra.mxu0 %v962_v5  ;;  %929 = vmatprep.mubr.msk.f32.mxu0 %vm1077_vm0, %v1076_v0 }
 0x309   :  { %943 = vmatpush3.bf16.msra.mxu1 %v994_v11 }
 0x30a   :  { %930 = vmatmul.mubr.msk.f32.vlgmr.msra.gmra.mrb[10].mxu0 %vm209_vm4, %v1230_v23  ;;  %944 = vmatprep.subr.bf16.mxu1 %v1076_v0 }
 0x30d   :  { %945 = vmatpush3.bf16.msra.mxu1 %v995_v12 }
 0x30e   :  { %946 = vmatprep.subr.bf16.mxu1 %v1076_v0 }
 0x311   :  { %947 = vmatpush3.bf16.msra.mxu1 %v996_v13 }
 0x3d9   :  { %v562_v14 = vpop.f32.mrb[8].mxu0 }
 0x3da   :  { %v638_v15 = vmul.f32 %v562_v14, %v1253_v32  ;;  %v924_v16 = vpop.f32.mrb[9].mxu0 }
 0x3dc   :  { %v640_v18 = vmul.f32 %v638_v15, %v638_v15 }
 0x3dd   :  { %v634_v17 = vpop.f32.mrb[10].mxu0 }
 0x3de   :  { %v639_v19 = vmul.f32 %v634_v17, %v1253_v32  ;;  %v931_v20 = vpop.f32.mrb[11].mxu0 }
 0x3e0   :  { %v641_v21 = vsub.f32 %v639_v19, %v640_v18 }
 0x3e2   :  { %v642_v22 = vmax.f32 %v641_v21, 0.0 }
 0x3e4   :  { %v643_v23 = vadd.f32 1e-05, %v642_v22 }
 0x3e6   :  { %999 = vrsqrt.f32 %v643_v23 }
 0x3f0   :  { %v1000_v25 = vpop.eup %999 }
 0x3f1   :  { %v646_v0 = vmul.f32 %v1000_v25, %v645_v24 }
 0x3f3   :  { %v648_v27 = vmul.f32 %v646_v0, %v638_v15  ;;  %v653_v28 = vrot.slane %v646_v0, %v1261_v44 }
 0x3f5   :  { %v649_v29 = vsub.f32 %v647_v26, %v648_v27  ;;  %v654_v30 = vmul.f32 %v653_v28, %v489_v61  ;;  %v655_v31 = vmul.f32 %v653_v28, %v492_v63 }
 0x3f7   :  { %v660_v32 = vrot.slane %v649_v29, %v1261_v44 }
 0x3f9   :  { %v662_v33 = vadd.f32 %v660_v32, %v654_v30  ;;  %v663_v34 = vadd.f32 %v660_v32, %v655_v31 }
 0x3fb   :  { %v664_v35 = vmax.f32 %v662_v33, 0.0  ;;  %v665_v36 = vmax.f32 %v663_v34, 0.0 }
 0x3fd   :  { %v823_v37 = vpack.c.bf16 %v665_v36, %v664_v35 }
 0x3ff   :  { %949 = vmatmul.mubr.msk.bf16.vlgmr.msra.gmra.mrb[4].mxu1 %vm1274_vm7, %v823_v37 }
 0x4d2   :  { %v774_v39 = vpop.f32.mrb[4].mxu1 }
 0x4d3   :  { %v775_v40 = vadd.f32 %v813_v38, %v774_v39  ;;  %v950_v41 = vpop.f32.mrb[5].mxu1 }
 0x4d4   :  { %v777_v42 = vpop.f32.mrb[6].mxu1 }
 0x4d5   :  { %781 = vst [vmem:[%s1328_s11] sm:$0xff] %v775_v40  ;;  %v778_v43 = vadd.f32 %v813_v38, %v777_v42  ;;  %v951_v44 = vpop.f32.mrb[7].mxu1 }
 0x4d7   :  { %782 = vst [vmem:[%s1328_s11 + $0x8] sm:$0xff] %v778_v43 }
 0x4d8   :  { %787 = vsyncpa [#allocation5], 1 }
 0x4d9   :  { %788 = vsyncpa [#allocation7], 1 }

</bundles_post_ra>
